<compile_context>
chip_gen: v6e
topology: v6e:2x2x1
jax: 0.10.0
libtpu: 0.0.40
codegen_flags: <defaults>
</compile_context>

<pallas_src>
import jax
import jax.numpy as jnp
from jax import lax
from jax.experimental import pallas as pl
from jax.experimental.pallas import tpu as pltpu


def _relu_out_kernel(x_ref, w_ref, b_ref, out_ref):
    """out = relu((x @ W) @ W.T + b); no activation writeback."""
    x = x_ref[...]                                       # (TN, D)
    w = w_ref[...]                                       # (D, H)
    h = jnp.dot(x, w, preferred_element_type=jnp.float32)            # (TN, H)
    # h @ W.T without materializing a transpose: contract H with H on the MXU.
    z = lax.dot_general(h, w, dimension_numbers=(((1,), (1,)), ((), ())),
                        preferred_element_type=jnp.float32)          # (TN, D)
    z = z + b_ref[...]                                   # bias broadcast over rows
    out_ref[...] = jnp.maximum(z, 0.0).astype(out_ref.dtype)


def _relu_out_acts_kernel(x_ref, w_ref, b_ref, slab_ref):
    """Lane-dense packed output: slab = [out | z | h] along lanes (width 2D+H)."""
    x = x_ref[...]                                       # (TN, D)
    w = w_ref[...]                                       # (D, H)
    h = jnp.dot(x, w, preferred_element_type=jnp.float32)            # (TN, H)
    z = lax.dot_general(h, w, dimension_numbers=(((1,), (1,)), ((), ())),
                        preferred_element_type=jnp.float32)          # (TN, D)
    z = z + b_ref[...]
    out = jnp.maximum(z, 0.0)
    slab_ref[...] = jnp.concatenate([out, z, h], axis=-1).astype(slab_ref.dtype)


def relu_out(x, W, b, with_activations=False, row_tile=512):
    N, D = x.shape
    D2, H = W.shape
    assert D == D2 and b.shape == (D,)
    b2d = b.reshape(1, D)

    # Row tiling: single block for small N, otherwise TN rows per grid step.
    # W / b stay VMEM-resident across the grid (constant index_map). Rows are
    # independent, so an overhanging last block is safe (OOB writes masked).
    TN = N if N <= row_tile else row_tile
    grid = (pl.cdiv(N, TN),)

    in_specs = [
        pl.BlockSpec((TN, D), lambda i: (i, 0)),   # x rows
        pl.BlockSpec((D, H), lambda i: (0, 0)),    # W, resident across grid
        pl.BlockSpec((1, D), lambda i: (0, 0)),    # b, resident across grid
    ]

    itemsize = x.dtype.itemsize
    flops = 4 * N * D * H   # two (N,D)x(D,H)-sized matmuls
    in_bytes = (x.size + W.size + b.size) * itemsize
    compiler_params = pltpu.CompilerParams(dimension_semantics=("parallel",))

    if not with_activations:
        # Single output stream: no wasted h/z HBM writeback.
        out = pl.pallas_call(
            _relu_out_kernel,
            grid=grid,
            in_specs=in_specs,
            out_specs=pl.BlockSpec((TN, D), lambda i: (i, 0)),
            out_shape=jax.ShapeDtypeStruct((N, D), x.dtype),
            compiler_params=compiler_params,
            cost_estimate=pl.CostEstimate(
                flops=flops, transcendentals=0,
                bytes_accessed=in_bytes + N * D * itemsize),
        )(x, W, b2d)
        return out

    slab_w = 2 * D + H  # [out | z | h]; == 128 lanes for D=32, H=64 (lane-dense)
    slab = pl.pallas_call(
        _relu_out_acts_kernel,
        grid=grid,
        in_specs=in_specs,
        out_specs=pl.BlockSpec((TN, slab_w), lambda i: (i, 0)),
        out_shape=jax.ShapeDtypeStruct((N, slab_w), x.dtype),
        compiler_params=compiler_params,
        cost_estimate=pl.CostEstimate(
            flops=flops, transcendentals=0,
            bytes_accessed=in_bytes + N * slab_w * itemsize),
    )(x, W, b2d)

    out = slab[:, :D]
    z = slab[:, D:2 * D]
    h = slab[:, 2 * D:]
    return out, {"h": h, "z": z}


if __name__ == "__main__":
    # Small shapes consistent with the module: batch=8, input_dim=32, hidden_dim=64
    batch, input_dim, hidden_dim = 8, 32, 64

    key = jax.random.PRNGKey(0)
    kx, kw = jax.random.split(key)

    # Deterministic parameter init matching torch init semantics:
    #   W ~ randn(input_dim, hidden_dim) / sqrt(input_dim), b = zeros(input_dim)
    W = (jax.random.normal(kw, (input_dim, hidden_dim), dtype=jnp.float32)
         / jnp.sqrt(jnp.float32(input_dim)))
    b = jnp.zeros((input_dim,), dtype=jnp.float32)

    x = jax.random.normal(kx, (batch, input_dim), dtype=jnp.float32)

    out_only = relu_out(x, W, b, with_activations=False)
    out, acts = relu_out(x, W, b, with_activations=True)
    jax.block_until_ready((out_only, out, acts))

    # Reference check in plain JAX
    h_ref = x @ W
    z_ref = h_ref @ W.T + b
    out_ref = jnp.maximum(z_ref, 0.0)
    assert jnp.allclose(out_only, out_ref, atol=1e-5, rtol=1e-5)
    assert jnp.allclose(out, out_ref, atol=1e-5, rtol=1e-5)
    assert jnp.allclose(acts["h"], h_ref, atol=1e-5, rtol=1e-5)
    assert jnp.allclose(acts["z"], z_ref, atol=1e-5, rtol=1e-5)

    print("KERNEL_OK")
</pallas_src>

<mosaic_0001>
module attributes {stable_mosaic.version = 11 : i64} {
  func.func @_relu_out_kernel(%arg0: i32, %arg1: memref<8x32xf32, #tpu.memory_space<vmem>>, %arg2: memref<32x64xf32, #tpu.memory_space<vmem>>, %arg3: memref<1x32xf32, #tpu.memory_space<vmem>>, %arg4: memref<8x32xf32, #tpu.memory_space<vmem>>) attributes {dimension_semantics = [#tpu.dimension_semantics<parallel>], iteration_bounds = array<i64: 1>, scalar_prefetch = 0 : i64, scratch_operands = 0 : i64, tpu.core_type = #tpu.core_type<tc>, window_params = [{transform_indices = @transform_0, window_bounds = array<i64: 8, 32>}, {pipeline_mode = #tpu.pipeline_mode<synchronous>, transform_indices = @transform_1, window_bounds = array<i64: 32, 64>}, {pipeline_mode = #tpu.pipeline_mode<synchronous>, transform_indices = @transform_2, window_bounds = array<i64: 1, 32>}, {transform_indices = @transform_3, window_bounds = array<i64: 8, 32>}]} {
    %c0 = arith.constant 0 : index
    %c0_0 = arith.constant 0 : index
    %0 = vector.load %arg1[%c0, %c0_0] : memref<8x32xf32, #tpu.memory_space<vmem>>, vector<8x32xf32>
    %c0_1 = arith.constant 0 : index
    %c0_2 = arith.constant 0 : index
    %1 = vector.load %arg2[%c0_1, %c0_2] : memref<32x64xf32, #tpu.memory_space<vmem>>, vector<32x64xf32>
    %cst = arith.constant dense<0.000000e+00> : vector<8x64xf32>
    %2 = tpu.matmul %0, %1, %cst {dimension_numbers = #tpu.dot_dimension_numbers<[1], [0], [0], [1], [0, 0, 1, 1], [], []>} : vector<8x32xf32>, vector<32x64xf32>, vector<8x64xf32> -> vector<8x64xf32>
    %cst_3 = arith.constant dense<0.000000e+00> : vector<8x32xf32>
    %3 = tpu.matmul %2, %1, %cst_3 {dimension_numbers = #tpu.dot_dimension_numbers<[1], [1], [0], [0], [0, 0, 1, 0], [], []>} : vector<8x64xf32>, vector<32x64xf32>, vector<8x32xf32> -> vector<8x32xf32>
    %c0_4 = arith.constant 0 : index
    %c0_5 = arith.constant 0 : index
    %4 = vector.load %arg3[%c0_4, %c0_5] : memref<1x32xf32, #tpu.memory_space<vmem>>, vector<1x32xf32>
    %5 = vector.broadcast %4 : vector<1x32xf32> to vector<8x32xf32>
    %6 = arith.addf %3, %5 : vector<8x32xf32>
    %cst_6 = arith.constant 0.000000e+00 : f32
    %7 = vector.broadcast %cst_6 : f32 to vector<8x32xf32>
    %8 = arith.maximumf %6, %7 : vector<8x32xf32>
    %c0_7 = arith.constant 0 : index
    %c0_8 = arith.constant 0 : index
    %9 = vector.load %arg4[%c0_7, %c0_8] : memref<8x32xf32, #tpu.memory_space<vmem>>, vector<8x32xf32>
    tpu.vector_store %arg4[%c0_7, %c0_8], %8 {strides = array<i32>} : memref<8x32xf32, #tpu.memory_space<vmem>>, vector<8x32xf32>,
    return
  }
  func.func @transform_0(%arg0: i32) -> (i32, i32) {
    %c0_i32 = arith.constant 0 : i32
    %c0_i32_0 = arith.constant 0 : i32
    return %arg0, %c0_i32 : i32, i32
  }
  func.func @transform_1(%arg0: i32) -> (i32, i32) {
    %c0_i32 = arith.constant 0 : i32
    %c0_i32_0 = arith.constant 0 : i32
    %c0_i32_1 = arith.constant 0 : i32
    return %c0_i32, %c0_i32_0 : i32, i32
  }
  func.func @transform_2(%arg0: i32) -> (i32, i32) {
    %c0_i32 = arith.constant 0 : i32
    %c0_i32_0 = arith.constant 0 : i32
    %c0_i32_1 = arith.constant 0 : i32
    return %c0_i32, %c0_i32_0 : i32, i32
  }
  func.func @transform_3(%arg0: i32) -> (i32, i32) {
    %c0_i32 = arith.constant 0 : i32
    %c0_i32_0 = arith.constant 0 : i32
    return %arg0, %c0_i32 : i32, i32
  }
}

</mosaic_0001>

<bundles_post_ra>
// kernel: tpu_custom_call.1
= control target key start
LH: loop header
LB: loop body
LE: loop exit
PB: predicated region body
PF: predicated region fallthrough
CT: control target
= control target key end

     0   :  { %8 = vsyncpa [#allocation3], 0  ;;  %s389_s0 = inlined_call_operand.hbm [shape: f32[8,32], index: 0, kind: input, shape index: {}]   ;;  %s390_s1 = inlined_call_operand.hbm [shape: f32[32,64], index: 1, kind: input, shape index: {}]   ;;  %s391_s2 = inlined_call_operand.vmem [shape: f32[1,32], index: 2, kind: input, shape index: {}]   ;;  %s392_s3 = inlined_call_operand.hbm [shape: f32[8,32], index: 3, kind: output, shape index: {}]  }
   0x1   :  { %9 = vsyncpa [#allocation6], 0 }
   0x2   :  { %10 = vsyncpa [#allocation4], 0  ;;  %s343_s12 = smov [#allocation2]   ;;  %s344_s14 = smov [#allocation5]  }
   0x3   :  { %s17_s13 = sshll.u32 %s343_s12, 4  ;;  %s26_s15 = sshll.u32 %s344_s14, 4  ;;  %s18_s13 = int_to_ptr.vmem [resolvable:$true] %s17_s13  ;;  %s27_s15 = int_to_ptr.vmem [resolvable:$true] %s26_s15 }
   0x4   :  { %s285_s16 = scalar_lea.vmem %s18_s13, 128  ;;  %p290_p1 = scmp.lt.s32.totalorder %s18_s13, %s18_s13 }
   0x5   :  { %p286_p0 = scmp.ne.s32.totalorder %s18_s13, %s285_s16  ;;  %p291_p2 = scmp.lt.s32.totalorder %s285_s16, %s285_s16 }
   0x7   :  { %p292_p3 = por %p291_p2, %p290_p1 }
   0x9   :  { %p293_p4 = pnand %p292_p3, %p286_p0 }
   0xb   :  { %296 = shalt.err (!%p293_p4)
}
   0xc   :  { %20 = dma.hbm_to_vmem [thread:$0]  %s389_s0, 128, %s18_s13, [#allocation3]  }
   0xd   :  { %s305_s19 = scalar_lea.vmem %s27_s15, 512  ;;  %p310_p6 = scmp.lt.s32.totalorder %s27_s15, %s27_s15 }
   0xe   :  { %p306_p5 = scmp.ne.s32.totalorder %s27_s15, %s305_s19  ;;  %p311_p7 = scmp.lt.s32.totalorder %s305_s19, %s305_s19 }
  0x10   :  { %p312_p8 = por %p311_p7, %p310_p6 }
  0x12   :  { %p313_p9 = pnand %p312_p8, %p306_p5 }
  0x14   :  { %316 = shalt.err (!%p313_p9)
}
  0x15   :  { %s345_s20 = smov 128   ;;  %s346_s21 = smov 8  }
  0x16   :  { %32 = dma.hbm_to_vmem [thread:$0]  %s390_s1, 512, %s27_s15, [#allocation6], %s345_s20, %s345_s20, %s346_s21  }
  0x17   :  { %337 = dma.done.wait [#allocation3], 128  }
  0x18   :  { %338 = vsyncadd [#allocation3], 4294967168 }
  0x19   :  { %339 = dma.done.wait [#allocation6], 512  }
  0x1a   :  { %340 = vsyncadd [#allocation6], 4294966784  ;;  %v347_v0 = vmov 0.0   ;;  %vm348_vm0 = vmmov 0   ;;  %vm127_vm1 = vcmask 523264   ;;  %v45_v1 = vld [vmem:[#allocation5 + $0x18] sm:$0xff] }
  0x1b   :  { %248 = vmatprep.subr.mxu0 %v347_v0  ;;  %256 = vmatprep.mubr.msk.f32.mxu0 %vm348_vm0, %v347_v0  ;;  %v44_v2 = vld [vmem:[#allocation5 + $0x10] sm:$0xff]  ;;  %v43_v3 = vld [vmem:[#allocation5 + $0x8] sm:$0xff]  ;;  %v42_v4 = vld [vmem:[#allocation5] sm:$0xff]  ;;  %vm46_vm2 = vcmask 261120   ;;  %s349_s24 = smov [#allocation7]  }
  0x1c   :  { %259 = vmatprep.subr.mxu1 %v347_v0  ;;  %267 = vmatprep.mubr.msk.f32.mxu1 %vm348_vm0, %v347_v0  ;;  %v41_v5 = vld [vmem:[#allocation2] sm:$0xff]  ;;  %s221_s25 = sshll.u32 %s349_s24, 4  ;;  %s222_s25 = int_to_ptr.vmem [resolvable:$true] %s221_s25 }
  0x1d   :  { %249 = vmatpush3.msra.mxu0 %v45_v1  ;;  %260 = vmatpush3.xpose.msk.msra.mxu1 %vm127_vm1, %v45_v1  ;;  %v232_v8 = vld [vmem:[%s391_s2] ss:$0 sm:$0xff]  ;;  %s317_s26 = scalar_lea.vmem %s222_s25, 128  ;;  %p322_p11 = scmp.lt.s32.totalorder %s222_s25, %s222_s25 }
  0x1e   :  { %250 = vmatprep.subr.mxu0 %v347_v0  ;;  %261 = vmatprep.subr.mxu1 %v347_v0  ;;  %p318_p10 = scmp.ne.s32.totalorder %s222_s25, %s317_s26  ;;  %p323_p12 = scmp.lt.s32.totalorder %s317_s26, %s317_s26 }
  0x1f   :  { %251 = vmatpush3.msra.mxu0 %v44_v2 }
  0x20   :  { %252 = vmatprep.subr.mxu0 %v347_v0  ;;  %p324_p13 = por %p323_p12, %p322_p11 }
  0x21   :  { %253 = vmatpush3.msra.mxu0 %v43_v3  ;;  %262 = vmatpush3.xpose.msk.msra.mxu1 %vm127_vm1, %v44_v2 }
  0x22   :  { %254 = vmatprep.subr.mxu0 %v347_v0  ;;  %263 = vmatprep.subr.mxu1 %v347_v0  ;;  %p325_p0 = pnand %p324_p13, %p318_p10 }
  0x23   :  { %255 = vmatpush3.msra.mxu0 %v42_v4 }
  0x24   :  { %257 = vmatmul.mubr.msk.f32.vlgmr.msra.gmra.mxu0 %vm46_vm2, %v41_v5 }
  0x25   :  { %264 = vmatpush3.xpose.msk.msra.mxu1 %vm127_vm1, %v43_v3 }
  0x26   :  { %265 = vmatprep.subr.mxu1 %v347_v0 }
  0x29   :  { %266 = vmatpush3.xpose.msk.msra.mxu1 %vm127_vm1, %v42_v4 }
  0xe4   :  { %v116_v6 = vpop.f32.mrf.mxu0 }
  0xe5   :  { %268 = vmatmul.mubr.msk.f32.vlgmr.msra.gmra.mxu1 %vm127_vm1, %v116_v6 }
  0xe6   :  { %v258_v7 = vpop.f32.mrf.mxu0 }
 0x1a5   :  { %v209_v9 = vpop.f32.mrf.mxu1 }
 0x1a6   :  { %v210_v10 = vadd.f32 %v232_v8, %v209_v9 }
 0x1a7   :  { %v269_v11 = vpop.f32.mrf.mxu1 }
 0x1a8   :  { %v213_v12 = vmax.f32 %v210_v10, 0.0 }
 0x1aa   :  { %214 = vst.msk [vmem:[#allocation7] sm:$0xff] %vm46_vm2, %v213_v12 }
 0x1ab   :  { %328 = shalt.err (!%p325_p0)
}
 0x1ac   :  { %224 = dma.vmem_to_hbm [thread:$0]  %s222_s25, 128, %s392_s3, [#allocation4]  }
 0x1ad   :  { %341 = dma.done.wait [#allocation4], 128  }
 0x1ae   :  { %342 = vsyncadd [#allocation4], 4294967168 }
 0x1af   :  { %228 = vsyncpa [#allocation3], 1 }
 0x1b0   :  { %229 = vsyncpa [#allocation6], 1 }
 0x1b1   :  { %230 = vsyncpa [#allocation4], 1 }

</bundles_post_ra>
